<compile_context>
chip_gen: v6e
topology: v6e:2x2x1
jax: 0.10.0
libtpu: 0.0.40
codegen_flags: <defaults>
</compile_context>

<pallas_src>
import functools

import jax
import jax.numpy as jnp
from jax.experimental import pallas as pl
from jax.experimental.pallas import tpu as pltpu


def _round_up(x, m):
    return (x + m - 1) // m * m


# ------------------------------ fused kernel --------------------------------

def _decoder_kernel(ids_ref,            # SMEM  [B_pad] int32 token ids
                    emb_ref,            # HBM   [V, E]  embedding table (pl.ANY)
                    h_ref, c_ref,       # VMEM  [L, B_pad, H] previous state
                    w_ref,              # VMEM  [L, D_max+H, 4H] fused gate weights
                    b_ref,              # VMEM  [L, 1, 4H]       fused gate biases
                    wfc_ref, bfc_ref,   # VMEM  [H, O_pad], [1, O_pad]
                    pred_ref,           # out   [B_pad, O_pad]
                    h_out_ref,          # out   [L, B_pad, H]
                    c_out_ref,          # out   [L, B_pad, H]
                    x_emb,              # VMEM scratch [B_pad, E]
                    sem,                # DMA semaphores (B_pad,)
                    *, n_layers, emb_dim, hid_dim, d_in_max, batch_pad):
    H = hid_dim

    # ---- embedding gather: per-row DMA from the HBM table (ids from SMEM) ----
    copies = []
    for i in range(batch_pad):
        row = ids_ref[i]
        cp = pltpu.make_async_copy(
            emb_ref.at[pl.ds(row, 1)],      # [1, E] row of the HBM table
            x_emb.at[pl.ds(i, 1)],          # [1, E] row of the VMEM buffer
            sem.at[i])
        cp.start()
        copies.append(cp)
    for cp in copies:
        cp.wait()

    x = x_emb[...]                          # [B_pad, E]
    if emb_dim < d_in_max:                  # pad features so all layers share W
        x = jnp.concatenate(
            [x, jnp.zeros((batch_pad, d_in_max - emb_dim), x.dtype)], axis=1)

    # ---- n_layers single-step LSTM cells, one fused matmul per layer --------
    h_last = None
    for l in range(n_layers):
        h = h_ref[l]                                       # [B_pad, H]
        c = c_ref[l]                                       # [B_pad, H]
        xh = jnp.concatenate([x, h], axis=1)               # [B_pad, D_max+H]
        gates = (jnp.dot(xh, w_ref[l],
                         preferred_element_type=jnp.float32)
                 + b_ref[l])                               # [B_pad, 4H]

        i_g = jax.nn.sigmoid(gates[:, 0 * H:1 * H])
        f_g = jax.nn.sigmoid(gates[:, 1 * H:2 * H])
        g_g = jnp.tanh(gates[:, 2 * H:3 * H])
        o_g = jax.nn.sigmoid(gates[:, 3 * H:4 * H])

        c_new = f_g * c + i_g * g_g
        h_new = o_g * jnp.tanh(c_new)

        h_out_ref[l] = h_new.astype(h_out_ref.dtype)
        c_out_ref[l] = c_new.astype(c_out_ref.dtype)

        h_last = h_new
        x = h_new
        if H < d_in_max:
            x = jnp.concatenate(
                [x, jnp.zeros((batch_pad, d_in_max - H), x.dtype)], axis=1)

    # ---- fc_out (lane-dense, O padded to multiple of 128) -------------------
    pred_ref[...] = (jnp.dot(h_last, wfc_ref[...],
                             preferred_element_type=jnp.float32)
                     + bfc_ref[...]).astype(pred_ref.dtype)


# --------------------------------- wrapper ----------------------------------

def decoder_forward(params, input_ids, hidden, cell, *, output_dim):
    """Mirrors Decoder.forward for a single decode step.

    input_ids: [B] int32 token ids
    hidden:    [n_layers, B, H]
    cell:      [n_layers, B, H]
    returns (prediction [B, output_dim], hidden, cell)
    """
    emb = params["emb"]                    # [V, E]
    w = params["w"]                        # [L, D_max+H, 4H]
    b = params["b"]                        # [L, 1, 4H]
    w_fc = params["w_fc"]                  # [H, O_pad]
    b_fc = params["b_fc"]                  # [1, O_pad]

    n_layers, B, H = hidden.shape
    E = emb.shape[1]
    d_in_max = max(E, H)
    o_pad = w_fc.shape[1]
    b_pad = _round_up(B, 8)                # full sublane

    ids_p = jnp.zeros((b_pad,), jnp.int32).at[:B].set(input_ids.astype(jnp.int32))
    hidden_p = jnp.zeros((n_layers, b_pad, H), jnp.float32).at[:, :B].set(hidden)
    cell_p = jnp.zeros((n_layers, b_pad, H), jnp.float32).at[:, :B].set(cell)

    kernel = functools.partial(
        _decoder_kernel, n_layers=n_layers, emb_dim=E, hid_dim=H,
        d_in_max=d_in_max, batch_pad=b_pad)

    vmem = pl.BlockSpec(memory_space=pltpu.MemorySpace.VMEM)
    smem = pl.BlockSpec(memory_space=pltpu.MemorySpace.SMEM)
    hbm = pl.BlockSpec(memory_space=pl.ANY)

    pred_p, h_new_p, c_new_p = pl.pallas_call(
        kernel,
        out_shape=(jax.ShapeDtypeStruct((b_pad, o_pad), jnp.float32),
                   jax.ShapeDtypeStruct((n_layers, b_pad, H), jnp.float32),
                   jax.ShapeDtypeStruct((n_layers, b_pad, H), jnp.float32)),
        in_specs=[smem, hbm, vmem, vmem, vmem, vmem, vmem, vmem],
        out_specs=(vmem, vmem, vmem),
        scratch_shapes=[pltpu.VMEM((b_pad, E), jnp.float32),
                        pltpu.SemaphoreType.DMA((b_pad,))],
        # hidden -> h_out, cell -> c_out updated in place (decode-loop friendly)
        input_output_aliases={2: 1, 3: 2},
    )(ids_p, emb, hidden_p, cell_p, w, b, w_fc, b_fc)

    return (pred_p[:B, :output_dim], h_new_p[:, :B], c_new_p[:, :B])


# ------------------------- deterministic parameters --------------------------

def init_params(key, vocab_size, emb_dim, hid_dim, n_layers, output_dim):
    ks = jax.random.split(key, 4)
    scale = 0.1
    H = hid_dim
    d_in_max = max(emb_dim, hid_dim)
    o_pad = _round_up(output_dim, 128)

    emb = scale * jax.random.normal(ks[0], (vocab_size, emb_dim), jnp.float32)

    w_layers, b_layers = [], []
    for l in range(n_layers):
        d_in = emb_dim if l == 0 else hid_dim
        kl = jax.random.fold_in(ks[1], l)
        k1, k2, k3, k4 = jax.random.split(kl, 4)
        # Pre-transposed, gate-fused layout: columns are (i | f | g | o) blocks.
        w_ih = scale * jax.random.normal(k1, (d_in, 4 * H), jnp.float32)
        w_hh = scale * jax.random.normal(k2, (H, 4 * H), jnp.float32)
        b_ih = scale * jax.random.normal(k3, (1, 4 * H), jnp.float32)
        b_hh = scale * jax.random.normal(k4, (1, 4 * H), jnp.float32)
        # Zero-pad input rows to d_in_max so every layer shares one stacked tensor.
        w_x = jnp.zeros((d_in_max, 4 * H), jnp.float32).at[:d_in].set(w_ih)
        w_layers.append(jnp.concatenate([w_x, w_hh], axis=0))   # [d_in_max+H, 4H]
        b_layers.append(b_ih + b_hh)                            # [1, 4H]

    w = jnp.stack(w_layers)                                     # [L, d_in_max+H, 4H]
    b = jnp.stack(b_layers)                                     # [L, 1, 4H]

    w_fc = scale * jax.random.normal(ks[2], (H, output_dim), jnp.float32)
    b_fc = scale * jax.random.normal(ks[3], (1, output_dim), jnp.float32)
    # Lane-dense fc_out: zero-pad the output dim up to a multiple of 128.
    w_fc_p = jnp.zeros((H, o_pad), jnp.float32).at[:, :output_dim].set(w_fc)
    b_fc_p = jnp.zeros((1, o_pad), jnp.float32).at[:, :output_dim].set(b_fc)

    return {"emb": emb, "w": w, "b": b, "w_fc": w_fc_p, "b_fc": b_fc_p}


# ------------------------------ pure-JAX reference ---------------------------

def decoder_reference(params, input_ids, hidden, cell, *, output_dim):
    emb = params["emb"]
    n_layers, B, H = hidden.shape
    E = emb.shape[1]
    d_in_max = params["w"].shape[1] - H

    x = jnp.take(emb, input_ids, axis=0)
    if E < d_in_max:
        x = jnp.pad(x, ((0, 0), (0, d_in_max - E)))

    h_out, c_out = [], []
    for l in range(n_layers):
        h, c = hidden[l], cell[l]
        xh = jnp.concatenate([x, h], axis=1)
        gates = xh @ params["w"][l] + params["b"][l]
        i_g = jax.nn.sigmoid(gates[:, 0 * H:1 * H])
        f_g = jax.nn.sigmoid(gates[:, 1 * H:2 * H])
        g_g = jnp.tanh(gates[:, 2 * H:3 * H])
        o_g = jax.nn.sigmoid(gates[:, 3 * H:4 * H])
        c_new = f_g * c + i_g * g_g
        h_new = o_g * jnp.tanh(c_new)
        h_out.append(h_new)
        c_out.append(c_new)
        x = h_new
        if H < d_in_max:
            x = jnp.pad(x, ((0, 0), (0, d_in_max - H)))

    pred = h_out[-1] @ params["w_fc"] + params["b_fc"]
    return pred[:, :output_dim], jnp.stack(h_out), jnp.stack(c_out)


# ----------------------------------- main ------------------------------------

if __name__ == "__main__":
    VOCAB = 100      # synthetic stand-in for the BERT embedding table rows
    EMB = 32         # emb_dim
    HID = 32         # hid_dim  (4H = 128 -> one lane tile of fused gates)
    N_LAYERS = 2
    OUT = 50         # output_dim (padded to 128 inside, sliced back)
    BATCH = 2

    key = jax.random.PRNGKey(0)
    kp, ki, kh, kc = jax.random.split(key, 4)

    params = init_params(kp, VOCAB, EMB, HID, N_LAYERS, OUT)

    input_ids = jax.random.randint(ki, (BATCH,), 0, VOCAB, dtype=jnp.int32)
    hidden = 0.1 * jax.random.normal(kh, (N_LAYERS, BATCH, HID), jnp.float32)
    cell = 0.1 * jax.random.normal(kc, (N_LAYERS, BATCH, HID), jnp.float32)

    pred, h_new, c_new = decoder_forward(params, input_ids, hidden, cell,
                                         output_dim=OUT)
    jax.block_until_ready((pred, h_new, c_new))

    assert pred.shape == (BATCH, OUT)
    assert h_new.shape == (N_LAYERS, BATCH, HID)
    assert c_new.shape == (N_LAYERS, BATCH, HID)

    # Numerical sanity check against a pure-JAX reference (tolerance covers
    # MXU vs XLA f32-matmul pass differences).
    pred_r, h_r, c_r = decoder_reference(params, input_ids, hidden, cell,
                                         output_dim=OUT)
    assert jnp.allclose(pred, pred_r, rtol=2e-2, atol=2e-3)
    assert jnp.allclose(h_new, h_r, rtol=2e-2, atol=2e-3)
    assert jnp.allclose(c_new, c_r, rtol=2e-2, atol=2e-3)

    print("KERNEL_OK")
</pallas_src>

<mosaic_0001>
module attributes {stable_mosaic.version = 11 : i64} {
  func.func @_decoder_kernel(%arg0: memref<8xi32, #tpu.memory_space<smem>>, %arg1: memref<100x32xf32, #tpu.memory_space<any>>, %arg2: memref<2x8x32xf32, #tpu.memory_space<vmem>>, %arg3: memref<2x8x32xf32, #tpu.memory_space<vmem>>, %arg4: memref<2x64x128xf32, #tpu.memory_space<vmem>>, %arg5: memref<2x1x128xf32, #tpu.memory_space<vmem>>, %arg6: memref<32x128xf32, #tpu.memory_space<vmem>>, %arg7: memref<1x128xf32, #tpu.memory_space<vmem>>, %arg8: memref<8x128xf32, #tpu.memory_space<vmem>>, %arg9: memref<2x8x32xf32, #tpu.memory_space<vmem>>, %arg10: memref<2x8x32xf32, #tpu.memory_space<vmem>>, %arg11: memref<8x32xf32, #tpu.memory_space<vmem>>, %arg12: memref<8x!tpu.dma_semaphore, #tpu.memory_space<semaphore_mem>>) attributes {dimension_semantics = [], scalar_prefetch = 0 : i64, scratch_operands = 2 : i64, tpu.core_type = #tpu.core_type<tc>} {
    %c0 = arith.constant 0 : index
    %0 = memref.load %arg0[%c0] : memref<8xi32, #tpu.memory_space<smem>>
    %c0_i32 = arith.constant 0 : i32
    %c0_i32_0 = arith.constant 0 : i32
    %1 = tpu.memref_slice %arg1[%0, %c0_i32_0] : memref<100x32xf32, #tpu.memory_space<any>> -> memref<1x32xf32, #tpu.memory_space<any>>
    %c0_i32_1 = arith.constant 0 : i32
    %c0_i32_2 = arith.constant 0 : i32
    %2 = tpu.memref_slice %arg11[%c0_i32_1, %c0_i32_2] : memref<8x32xf32, #tpu.memory_space<vmem>> -> memref<1x32xf32, #tpu.memory_space<vmem>>
    %3 = tpu.memref_slice %arg12[%c0_i32] : memref<8x!tpu.dma_semaphore, #tpu.memory_space<semaphore_mem>> -> memref<1x!tpu.dma_semaphore, #tpu.memory_space<semaphore_mem>>
    %4 = tpu.memref_squeeze %3 : memref<1x!tpu.dma_semaphore, #tpu.memory_space<semaphore_mem>> -> memref<!tpu.dma_semaphore, #tpu.memory_space<semaphore_mem>>
    tpu.enqueue_dma source(%1 : memref<1x32xf32, #tpu.memory_space<any>>) target(%2 : memref<1x32xf32, #tpu.memory_space<vmem>>) target_semaphore(%4 : memref<!tpu.dma_semaphore, #tpu.memory_space<semaphore_mem>>)
    %c1 = arith.constant 1 : index
    %5 = memref.load %arg0[%c1] : memref<8xi32, #tpu.memory_space<smem>>
    %c1_i32 = arith.constant 1 : i32
    %c0_i32_3 = arith.constant 0 : i32
    %6 = tpu.memref_slice %arg1[%5, %c0_i32_3] : memref<100x32xf32, #tpu.memory_space<any>> -> memref<1x32xf32, #tpu.memory_space<any>>
    %c1_i32_4 = arith.constant 1 : i32
    %c0_i32_5 = arith.constant 0 : i32
    %7 = tpu.memref_slice %arg11[%c1_i32_4, %c0_i32_5] : memref<8x32xf32, #tpu.memory_space<vmem>> -> memref<1x32xf32, #tpu.memory_space<vmem>>
    %8 = tpu.memref_slice %arg12[%c1_i32] : memref<8x!tpu.dma_semaphore, #tpu.memory_space<semaphore_mem>> -> memref<1x!tpu.dma_semaphore, #tpu.memory_space<semaphore_mem>>
    %9 = tpu.memref_squeeze %8 : memref<1x!tpu.dma_semaphore, #tpu.memory_space<semaphore_mem>> -> memref<!tpu.dma_semaphore, #tpu.memory_space<semaphore_mem>>
    tpu.enqueue_dma source(%6 : memref<1x32xf32, #tpu.memory_space<any>>) target(%7 : memref<1x32xf32, #tpu.memory_space<vmem>>) target_semaphore(%9 : memref<!tpu.dma_semaphore, #tpu.memory_space<semaphore_mem>>)
    %c2 = arith.constant 2 : index
    %10 = memref.load %arg0[%c2] : memref<8xi32, #tpu.memory_space<smem>>
    %c2_i32 = arith.constant 2 : i32
    %c0_i32_6 = arith.constant 0 : i32
    %11 = tpu.memref_slice %arg1[%10, %c0_i32_6] : memref<100x32xf32, #tpu.memory_space<any>> -> memref<1x32xf32, #tpu.memory_space<any>>
    %c2_i32_7 = arith.constant 2 : i32
    %c0_i32_8 = arith.constant 0 : i32
    %12 = tpu.memref_slice %arg11[%c2_i32_7, %c0_i32_8] : memref<8x32xf32, #tpu.memory_space<vmem>> -> memref<1x32xf32, #tpu.memory_space<vmem>>
    %13 = tpu.memref_slice %arg12[%c2_i32] : memref<8x!tpu.dma_semaphore, #tpu.memory_space<semaphore_mem>> -> memref<1x!tpu.dma_semaphore, #tpu.memory_space<semaphore_mem>>
    %14 = tpu.memref_squeeze %13 : memref<1x!tpu.dma_semaphore, #tpu.memory_space<semaphore_mem>> -> memref<!tpu.dma_semaphore, #tpu.memory_space<semaphore_mem>>
    tpu.enqueue_dma source(%11 : memref<1x32xf32, #tpu.memory_space<any>>) target(%12 : memref<1x32xf32, #tpu.memory_space<vmem>>) target_semaphore(%14 : memref<!tpu.dma_semaphore, #tpu.memory_space<semaphore_mem>>)
    %c3 = arith.constant 3 : index
    %15 = memref.load %arg0[%c3] : memref<8xi32, #tpu.memory_space<smem>>
    %c3_i32 = arith.constant 3 : i32
    %c0_i32_9 = arith.constant 0 : i32
    %16 = tpu.memref_slice %arg1[%15, %c0_i32_9] : memref<100x32xf32, #tpu.memory_space<any>> -> memref<1x32xf32, #tpu.memory_space<any>>
    %c3_i32_10 = arith.constant 3 : i32
    %c0_i32_11 = arith.constant 0 : i32
    %17 = tpu.memref_slice %arg11[%c3_i32_10, %c0_i32_11] : memref<8x32xf32, #tpu.memory_space<vmem>> -> memref<1x32xf32, #tpu.memory_space<vmem>>
    %18 = tpu.memref_slice %arg12[%c3_i32] : memref<8x!tpu.dma_semaphore, #tpu.memory_space<semaphore_mem>> -> memref<1x!tpu.dma_semaphore, #tpu.memory_space<semaphore_mem>>
    %19 = tpu.memref_squeeze %18 : memref<1x!tpu.dma_semaphore, #tpu.memory_space<semaphore_mem>> -> memref<!tpu.dma_semaphore, #tpu.memory_space<semaphore_mem>>
    tpu.enqueue_dma source(%16 : memref<1x32xf32, #tpu.memory_space<any>>) target(%17 : memref<1x32xf32, #tpu.memory_space<vmem>>) target_semaphore(%19 : memref<!tpu.dma_semaphore, #tpu.memory_space<semaphore_mem>>)
    %c4 = arith.constant 4 : index
    %20 = memref.load %arg0[%c4] : memref<8xi32, #tpu.memory_space<smem>>
    %c4_i32 = arith.constant 4 : i32
    %c0_i32_12 = arith.constant 0 : i32
    %21 = tpu.memref_slice %arg1[%20, %c0_i32_12] : memref<100x32xf32, #tpu.memory_space<any>> -> memref<1x32xf32, #tpu.memory_space<any>>
    %c4_i32_13 = arith.constant 4 : i32
    %c0_i32_14 = arith.constant 0 : i32
    %22 = tpu.memref_slice %arg11[%c4_i32_13, %c0_i32_14] : memref<8x32xf32, #tpu.memory_space<vmem>> -> memref<1x32xf32, #tpu.memory_space<vmem>>
    %23 = tpu.memref_slice %arg12[%c4_i32] : memref<8x!tpu.dma_semaphore, #tpu.memory_space<semaphore_mem>> -> memref<1x!tpu.dma_semaphore, #tpu.memory_space<semaphore_mem>>
    %24 = tpu.memref_squeeze %23 : memref<1x!tpu.dma_semaphore, #tpu.memory_space<semaphore_mem>> -> memref<!tpu.dma_semaphore, #tpu.memory_space<semaphore_mem>>
    tpu.enqueue_dma source(%21 : memref<1x32xf32, #tpu.memory_space<any>>) target(%22 : memref<1x32xf32, #tpu.memory_space<vmem>>) target_semaphore(%24 : memref<!tpu.dma_semaphore, #tpu.memory_space<semaphore_mem>>)
    %c5 = arith.constant 5 : index
    %25 = memref.load %arg0[%c5] : memref<8xi32, #tpu.memory_space<smem>>
    %c5_i32 = arith.constant 5 : i32
    %c0_i32_15 = arith.constant 0 : i32
    %26 = tpu.memref_slice %arg1[%25, %c0_i32_15] : memref<100x32xf32, #tpu.memory_space<any>> -> memref<1x32xf32, #tpu.memory_space<any>>
    %c5_i32_16 = arith.constant 5 : i32
    %c0_i32_17 = arith.constant 0 : i32
    %27 = tpu.memref_slice %arg11[%c5_i32_16, %c0_i32_17] : memref<8x32xf32, #tpu.memory_space<vmem>> -> memref<1x32xf32, #tpu.memory_space<vmem>>
    %28 = tpu.memref_slice %arg12[%c5_i32] : memref<8x!tpu.dma_semaphore, #tpu.memory_space<semaphore_mem>> -> memref<1x!tpu.dma_semaphore, #tpu.memory_space<semaphore_mem>>
    %29 = tpu.memref_squeeze %28 : memref<1x!tpu.dma_semaphore, #tpu.memory_space<semaphore_mem>> -> memref<!tpu.dma_semaphore, #tpu.memory_space<semaphore_mem>>
    tpu.enqueue_dma source(%26 : memref<1x32xf32, #tpu.memory_space<any>>) target(%27 : memref<1x32xf32, #tpu.memory_space<vmem>>) target_semaphore(%29 : memref<!tpu.dma_semaphore, #tpu.memory_space<semaphore_mem>>)
    %c6 = arith.constant 6 : index
    %30 = memref.load %arg0[%c6] : memref<8xi32, #tpu.memory_space<smem>>
    %c6_i32 = arith.constant 6 : i32
    %c0_i32_18 = arith.constant 0 : i32
    %31 = tpu.memref_slice %arg1[%30, %c0_i32_18] : memref<100x32xf32, #tpu.memory_space<any>> -> memref<1x32xf32, #tpu.memory_space<any>>
    %c6_i32_19 = arith.constant 6 : i32
    %c0_i32_20 = arith.constant 0 : i32
    %32 = tpu.memref_slice %arg11[%c6_i32_19, %c0_i32_20] : memref<8x32xf32, #tpu.memory_space<vmem>> -> memref<1x32xf32, #tpu.memory_space<vmem>>
    %33 = tpu.memref_slice %arg12[%c6_i32] : memref<8x!tpu.dma_semaphore, #tpu.memory_space<semaphore_mem>> -> memref<1x!tpu.dma_semaphore, #tpu.memory_space<semaphore_mem>>
    %34 = tpu.memref_squeeze %33 : memref<1x!tpu.dma_semaphore, #tpu.memory_space<semaphore_mem>> -> memref<!tpu.dma_semaphore, #tpu.memory_space<semaphore_mem>>
    tpu.enqueue_dma source(%31 : memref<1x32xf32, #tpu.memory_space<any>>) target(%32 : memref<1x32xf32, #tpu.memory_space<vmem>>) target_semaphore(%34 : memref<!tpu.dma_semaphore, #tpu.memory_space<semaphore_mem>>)
    %c7 = arith.constant 7 : index
    %35 = memref.load %arg0[%c7] : memref<8xi32, #tpu.memory_space<smem>>
    %c7_i32 = arith.constant 7 : i32
    %c0_i32_21 = arith.constant 0 : i32
    %36 = tpu.memref_slice %arg1[%35, %c0_i32_21] : memref<100x32xf32, #tpu.memory_space<any>> -> memref<1x32xf32, #tpu.memory_space<any>>
    %c7_i32_22 = arith.constant 7 : i32
    %c0_i32_23 = arith.constant 0 : i32
    %37 = tpu.memref_slice %arg11[%c7_i32_22, %c0_i32_23] : memref<8x32xf32, #tpu.memory_space<vmem>> -> memref<1x32xf32, #tpu.memory_space<vmem>>
    %38 = tpu.memref_slice %arg12[%c7_i32] : memref<8x!tpu.dma_semaphore, #tpu.memory_space<semaphore_mem>> -> memref<1x!tpu.dma_semaphore, #tpu.memory_space<semaphore_mem>>
    %39 = tpu.memref_squeeze %38 : memref<1x!tpu.dma_semaphore, #tpu.memory_space<semaphore_mem>> -> memref<!tpu.dma_semaphore, #tpu.memory_space<semaphore_mem>>
    tpu.enqueue_dma source(%36 : memref<1x32xf32, #tpu.memory_space<any>>) target(%37 : memref<1x32xf32, #tpu.memory_space<vmem>>) target_semaphore(%39 : memref<!tpu.dma_semaphore, #tpu.memory_space<semaphore_mem>>)
    %c0_i32_24 = arith.constant 0 : i32
    %c0_i32_25 = arith.constant 0 : i32
    %40 = tpu.memref_slice %arg1[%0, %c0_i32_25] : memref<100x32xf32, #tpu.memory_space<any>> -> memref<1x32xf32, #tpu.memory_space<any>>
    %c0_i32_26 = arith.constant 0 : i32
    %c0_i32_27 = arith.constant 0 : i32
    %41 = tpu.memref_slice %arg11[%c0_i32_26, %c0_i32_27] : memref<8x32xf32, #tpu.memory_space<vmem>> -> memref<1x32xf32, #tpu.memory_space<vmem>>
    %42 = tpu.memref_slice %arg12[%c0_i32_24] : memref<8x!tpu.dma_semaphore, #tpu.memory_space<semaphore_mem>> -> memref<1x!tpu.dma_semaphore, #tpu.memory_space<semaphore_mem>>
    %43 = tpu.memref_squeeze %42 : memref<1x!tpu.dma_semaphore, #tpu.memory_space<semaphore_mem>> -> memref<!tpu.dma_semaphore, #tpu.memory_space<semaphore_mem>>
    tpu.wait_dma2 semaphore(%43 : memref<!tpu.dma_semaphore, #tpu.memory_space<semaphore_mem>>) src(%40 : memref<1x32xf32, #tpu.memory_space<any>>) dst(%41 : memref<1x32xf32, #tpu.memory_space<vmem>>)
    %c1_i32_28 = arith.constant 1 : i32
    %c0_i32_29 = arith.constant 0 : i32
    %44 = tpu.memref_slice %arg1[%5, %c0_i32_29] : memref<100x32xf32, #tpu.memory_space<any>> -> memref<1x32xf32, #tpu.memory_space<any>>
    %c1_i32_30 = arith.constant 1 : i32
    %c0_i32_31 = arith.constant 0 : i32
    %45 = tpu.memref_slice %arg11[%c1_i32_30, %c0_i32_31] : memref<8x32xf32, #tpu.memory_space<vmem>> -> memref<1x32xf32, #tpu.memory_space<vmem>>
    %46 = tpu.memref_slice %arg12[%c1_i32_28] : memref<8x!tpu.dma_semaphore, #tpu.memory_space<semaphore_mem>> -> memref<1x!tpu.dma_semaphore, #tpu.memory_space<semaphore_mem>>
    %47 = tpu.memref_squeeze %46 : memref<1x!tpu.dma_semaphore, #tpu.memory_space<semaphore_mem>> -> memref<!tpu.dma_semaphore, #tpu.memory_space<semaphore_mem>>
    tpu.wait_dma2 semaphore(%47 : memref<!tpu.dma_semaphore, #tpu.memory_space<semaphore_mem>>) src(%44 : memref<1x32xf32, #tpu.memory_space<any>>) dst(%45 : memref<1x32xf32, #tpu.memory_space<vmem>>)
    %c2_i32_32 = arith.constant 2 : i32
    %c0_i32_33 = arith.constant 0 : i32
    %48 = tpu.memref_slice %arg1[%10, %c0_i32_33] : memref<100x32xf32, #tpu.memory_space<any>> -> memref<1x32xf32, #tpu.memory_space<any>>
    %c2_i32_34 = arith.constant 2 : i32
    %c0_i32_35 = arith.constant 0 : i32
    %49 = tpu.memref_slice %arg11[%c2_i32_34, %c0_i32_35] : memref<8x32xf32, #tpu.memory_space<vmem>> -> memref<1x32xf32, #tpu.memory_space<vmem>>
    %50 = tpu.memref_slice %arg12[%c2_i32_32] : memref<8x!tpu.dma_semaphore, #tpu.memory_space<semaphore_mem>> -> memref<1x!tpu.dma_semaphore, #tpu.memory_space<semaphore_mem>>
    %51 = tpu.memref_squeeze %50 : memref<1x!tpu.dma_semaphore, #tpu.memory_space<semaphore_mem>> -> memref<!tpu.dma_semaphore, #tpu.memory_space<semaphore_mem>>
    tpu.wait_dma2 semaphore(%51 : memref<!tpu.dma_semaphore, #tpu.memory_space<semaphore_mem>>) src(%48 : memref<1x32xf32, #tpu.memory_space<any>>) dst(%49 : memref<1x32xf32, #tpu.memory_space<vmem>>)
    %c3_i32_36 = arith.constant 3 : i32
    %c0_i32_37 = arith.constant 0 : i32
    %52 = tpu.memref_slice %arg1[%15, %c0_i32_37] : memref<100x32xf32, #tpu.memory_space<any>> -> memref<1x32xf32, #tpu.memory_space<any>>
    %c3_i32_38 = arith.constant 3 : i32
    %c0_i32_39 = arith.constant 0 : i32
    %53 = tpu.memref_slice %arg11[%c3_i32_38, %c0_i32_39] : memref<8x32xf32, #tpu.memory_space<vmem>> -> memref<1x32xf32, #tpu.memory_space<vmem>>
    %54 = tpu.memref_slice %arg12[%c3_i32_36] : memref<8x!tpu.dma_semaphore, #tpu.memory_space<semaphore_mem>> -> memref<1x!tpu.dma_semaphore, #tpu.memory_space<semaphore_mem>>
    %55 = tpu.memref_squeeze %54 : memref<1x!tpu.dma_semaphore, #tpu.memory_space<semaphore_mem>> -> memref<!tpu.dma_semaphore, #tpu.memory_space<semaphore_mem>>
    tpu.wait_dma2 semaphore(%55 : memref<!tpu.dma_semaphore, #tpu.memory_space<semaphore_mem>>) src(%52 : memref<1x32xf32, #tpu.memory_space<any>>) dst(%53 : memref<1x32xf32, #tpu.memory_space<vmem>>)
    %c4_i32_40 = arith.constant 4 : i32
    %c0_i32_41 = arith.constant 0 : i32
    %56 = tpu.memref_slice %arg1[%20, %c0_i32_41] : memref<100x32xf32, #tpu.memory_space<any>> -> memref<1x32xf32, #tpu.memory_space<any>>
    %c4_i32_42 = arith.constant 4 : i32
    %c0_i32_43 = arith.constant 0 : i32
    %57 = tpu.memref_slice %arg11[%c4_i32_42, %c0_i32_43] : memref<8x32xf32, #tpu.memory_space<vmem>> -> memref<1x32xf32, #tpu.memory_space<vmem>>
    %58 = tpu.memref_slice %arg12[%c4_i32_40] : memref<8x!tpu.dma_semaphore, #tpu.memory_space<semaphore_mem>> -> memref<1x!tpu.dma_semaphore, #tpu.memory_space<semaphore_mem>>
    %59 = tpu.memref_squeeze %58 : memref<1x!tpu.dma_semaphore, #tpu.memory_space<semaphore_mem>> -> memref<!tpu.dma_semaphore, #tpu.memory_space<semaphore_mem>>
    tpu.wait_dma2 semaphore(%59 : memref<!tpu.dma_semaphore, #tpu.memory_space<semaphore_mem>>) src(%56 : memref<1x32xf32, #tpu.memory_space<any>>) dst(%57 : memref<1x32xf32, #tpu.memory_space<vmem>>)
    %c5_i32_44 = arith.constant 5 : i32
    %c0_i32_45 = arith.constant 0 : i32
    %60 = tpu.memref_slice %arg1[%25, %c0_i32_45] : memref<100x32xf32, #tpu.memory_space<any>> -> memref<1x32xf32, #tpu.memory_space<any>>
    %c5_i32_46 = arith.constant 5 : i32
    %c0_i32_47 = arith.constant 0 : i32
    %61 = tpu.memref_slice %arg11[%c5_i32_46, %c0_i32_47] : memref<8x32xf32, #tpu.memory_space<vmem>> -> memref<1x32xf32, #tpu.memory_space<vmem>>
    %62 = tpu.memref_slice %arg12[%c5_i32_44] : memref<8x!tpu.dma_semaphore, #tpu.memory_space<semaphore_mem>> -> memref<1x!tpu.dma_semaphore, #tpu.memory_space<semaphore_mem>>
    %63 = tpu.memref_squeeze %62 : memref<1x!tpu.dma_semaphore, #tpu.memory_space<semaphore_mem>> -> memref<!tpu.dma_semaphore, #tpu.memory_space<semaphore_mem>>
    tpu.wait_dma2 semaphore(%63 : memref<!tpu.dma_semaphore, #tpu.memory_space<semaphore_mem>>) src(%60 : memref<1x32xf32, #tpu.memory_space<any>>) dst(%61 : memref<1x32xf32, #tpu.memory_space<vmem>>)
    %c6_i32_48 = arith.constant 6 : i32
    %c0_i32_49 = arith.constant 0 : i32
    %64 = tpu.memref_slice %arg1[%30, %c0_i32_49] : memref<100x32xf32, #tpu.memory_space<any>> -> memref<1x32xf32, #tpu.memory_space<any>>
    %c6_i32_50 = arith.constant 6 : i32
    %c0_i32_51 = arith.constant 0 : i32
    %65 = tpu.memref_slice %arg11[%c6_i32_50, %c0_i32_51] : memref<8x32xf32, #tpu.memory_space<vmem>> -> memref<1x32xf32, #tpu.memory_space<vmem>>
    %66 = tpu.memref_slice %arg12[%c6_i32_48] : memref<8x!tpu.dma_semaphore, #tpu.memory_space<semaphore_mem>> -> memref<1x!tpu.dma_semaphore, #tpu.memory_space<semaphore_mem>>
    %67 = tpu.memref_squeeze %66 : memref<1x!tpu.dma_semaphore, #tpu.memory_space<semaphore_mem>> -> memref<!tpu.dma_semaphore, #tpu.memory_space<semaphore_mem>>
    tpu.wait_dma2 semaphore(%67 : memref<!tpu.dma_semaphore, #tpu.memory_space<semaphore_mem>>) src(%64 : memref<1x32xf32, #tpu.memory_space<any>>) dst(%65 : memref<1x32xf32, #tpu.memory_space<vmem>>)
    %c7_i32_52 = arith.constant 7 : i32
    %c0_i32_53 = arith.constant 0 : i32
    %68 = tpu.memref_slice %arg1[%35, %c0_i32_53] : memref<100x32xf32, #tpu.memory_space<any>> -> memref<1x32xf32, #tpu.memory_space<any>>
    %c7_i32_54 = arith.constant 7 : i32
    %c0_i32_55 = arith.constant 0 : i32
    %69 = tpu.memref_slice %arg11[%c7_i32_54, %c0_i32_55] : memref<8x32xf32, #tpu.memory_space<vmem>> -> memref<1x32xf32, #tpu.memory_space<vmem>>
    %70 = tpu.memref_slice %arg12[%c7_i32_52] : memref<8x!tpu.dma_semaphore, #tpu.memory_space<semaphore_mem>> -> memref<1x!tpu.dma_semaphore, #tpu.memory_space<semaphore_mem>>
    %71 = tpu.memref_squeeze %70 : memref<1x!tpu.dma_semaphore, #tpu.memory_space<semaphore_mem>> -> memref<!tpu.dma_semaphore, #tpu.memory_space<semaphore_mem>>
    tpu.wait_dma2 semaphore(%71 : memref<!tpu.dma_semaphore, #tpu.memory_space<semaphore_mem>>) src(%68 : memref<1x32xf32, #tpu.memory_space<any>>) dst(%69 : memref<1x32xf32, #tpu.memory_space<vmem>>)
    %c0_56 = arith.constant 0 : index
    %c0_57 = arith.constant 0 : index
    %72 = vector.load %arg11[%c0_56, %c0_57] : memref<8x32xf32, #tpu.memory_space<vmem>>, vector<8x32xf32>
    %c0_58 = arith.constant 0 : index
    %c0_59 = arith.constant 0 : index
    %c0_60 = arith.constant 0 : index
    %73 = vector.load %arg2[%c0_58, %c0_59, %c0_60] : memref<2x8x32xf32, #tpu.memory_space<vmem>>, vector<1x8x32xf32>
    %74 = vector.shape_cast %73 : vector<1x8x32xf32> to vector<8x32xf32>
    %c0_61 = arith.constant 0 : index
    %c0_62 = arith.constant 0 : index
    %c0_63 = arith.constant 0 : index
    %75 = vector.load %arg3[%c0_61, %c0_62, %c0_63] : memref<2x8x32xf32, #tpu.memory_space<vmem>>, vector<1x8x32xf32>
    %76 = vector.shape_cast %75 : vector<1x8x32xf32> to vector<8x32xf32>
    %77 = tpu.concatenate %72, %74 in 1 : vector<8x32xf32>, vector<8x32xf32> -> vector<8x64xf32>
    %c0_64 = arith.constant 0 : index
    %c0_65 = arith.constant 0 : index
    %c0_66 = arith.constant 0 : index
    %78 = vector.load %arg4[%c0_64, %c0_65, %c0_66] : memref<2x64x128xf32, #tpu.memory_space<vmem>>, vector<1x64x128xf32>
    %79 = vector.shape_cast %78 : vector<1x64x128xf32> to vector<64x128xf32>
    %cst = arith.constant dense<0.000000e+00> : vector<8x128xf32>
    %80 = tpu.matmul %77, %79, %cst {dimension_numbers = #tpu.dot_dimension_numbers<[1], [0], [0], [1], [0, 0, 1, 1], [], []>} : vector<8x64xf32>, vector<64x128xf32>, vector<8x128xf32> -> vector<8x128xf32>
    %c0_67 = arith.constant 0 : index
    %c0_68 = arith.constant 0 : index
    %c0_69 = arith.constant 0 : index
    %81 = vector.load %arg5[%c0_67, %c0_68, %c0_69] : memref<2x1x128xf32, #tpu.memory_space<vmem>>, vector<1x1x128xf32>
    %82 = vector.shape_cast %81 : vector<1x1x128xf32> to vector<1x128xf32>
    %83 = vector.broadcast %82 : vector<1x128xf32> to vector<8x128xf32>
    %84 = arith.addf %80, %83 : vector<8x128xf32>
    %85 = vector.extract_strided_slice %84 {offsets = [0, 0], sizes = [8, 32], strides = [1, 1]} : vector<8x128xf32> to vector<8x32xf32>
    %86 = arith.negf %85 : vector<8x32xf32>
    %87 = math.exp %86 : vector<8x32xf32>
    %cst_70 = arith.constant 1.000000e+00 : f32
    %88 = vector.broadcast %cst_70 : f32 to vector<8x32xf32>
    %89 = arith.addf %88, %87 : vector<8x32xf32>
    %90 = arith.divf %88, %89 : vector<8x32xf32>
    %91 = vector.extract_strided_slice %84 {offsets = [0, 32], sizes = [8, 32], strides = [1, 1]} : vector<8x128xf32> to vector<8x32xf32>
    %92 = arith.negf %91 : vector<8x32xf32>
    %93 = math.exp %92 : vector<8x32xf32>
    %cst_71 = arith.constant 1.000000e+00 : f32
    %94 = vector.broadcast %cst_71 : f32 to vector<8x32xf32>
    %95 = arith.addf %94, %93 : vector<8x32xf32>
    %96 = arith.divf %94, %95 : vector<8x32xf32>
    %97 = vector.extract_strided_slice %84 {offsets = [0, 64], sizes = [8, 32], strides = [1, 1]} : vector<8x128xf32> to vector<8x32xf32>
    %98 = math.tanh %97 : vector<8x32xf32>
    %99 = vector.extract_strided_slice %84 {offsets = [0, 96], sizes = [8, 32], strides = [1, 1]} : vector<8x128xf32> to vector<8x32xf32>
    %100 = arith.negf %99 : vector<8x32xf32>
    %101 = math.exp %100 : vector<8x32xf32>
    %cst_72 = arith.constant 1.000000e+00 : f32
    %102 = vector.broadcast %cst_72 : f32 to vector<8x32xf32>
    %103 = arith.addf %102, %101 : vector<8x32xf32>
    %104 = arith.divf %102, %103 : vector<8x32xf32>
    %105 = arith.mulf %96, %76 : vector<8x32xf32>
    %106 = arith.mulf %90, %98 : vector<8x32xf32>
    %107 = arith.addf %105, %106 : vector<8x32xf32>
    %108 = math.tanh %107 : vector<8x32xf32>
    %109 = arith.mulf %104, %108 : vector<8x32xf32>
    %c0_73 = arith.constant 0 : index
    %c0_74 = arith.constant 0 : index
    %c0_75 = arith.constant 0 : index
    %110 = vector.load %arg9[%c0_73, %c0_74, %c0_75] : memref<2x8x32xf32, #tpu.memory_space<vmem>>, vector<1x8x32xf32>
    %111 = vector.shape_cast %110 : vector<1x8x32xf32> to vector<8x32xf32>
    %112 = vector.shape_cast %109 : vector<8x32xf32> to vector<1x8x32xf32>
    tpu.vector_store %arg9[%c0_73, %c0_74, %c0_75], %112 {strides = array<i32>} : memref<2x8x32xf32, #tpu.memory_space<vmem>>, vector<1x8x32xf32>,
    %c0_76 = arith.constant 0 : index
    %c0_77 = arith.constant 0 : index
    %c0_78 = arith.constant 0 : index
    %113 = vector.load %arg10[%c0_76, %c0_77, %c0_78] : memref<2x8x32xf32, #tpu.memory_space<vmem>>, vector<1x8x32xf32>
    %114 = vector.shape_cast %113 : vector<1x8x32xf32> to vector<8x32xf32>
    %115 = vector.shape_cast %107 : vector<8x32xf32> to vector<1x8x32xf32>
    tpu.vector_store %arg10[%c0_76, %c0_77, %c0_78], %115 {strides = array<i32>} : memref<2x8x32xf32, #tpu.memory_space<vmem>>, vector<1x8x32xf32>,
    %c1_79 = arith.constant 1 : index
    %c0_80 = arith.constant 0 : index
    %c0_81 = arith.constant 0 : index
    %116 = vector.load %arg2[%c1_79, %c0_80, %c0_81] : memref<2x8x32xf32, #tpu.memory_space<vmem>>, vector<1x8x32xf32>
    %117 = vector.shape_cast %116 : vector<1x8x32xf32> to vector<8x32xf32>
    %c1_82 = arith.constant 1 : index
    %c0_83 = arith.constant 0 : index
    %c0_84 = arith.constant 0 : index
    %118 = vector.load %arg3[%c1_82, %c0_83, %c0_84] : memref<2x8x32xf32, #tpu.memory_space<vmem>>, vector<1x8x32xf32>
    %119 = vector.shape_cast %118 : vector<1x8x32xf32> to vector<8x32xf32>
    %120 = tpu.concatenate %109, %117 in 1 : vector<8x32xf32>, vector<8x32xf32> -> vector<8x64xf32>
    %c1_85 = arith.constant 1 : index
    %c0_86 = arith.constant 0 : index
    %c0_87 = arith.constant 0 : index
    %121 = vector.load %arg4[%c1_85, %c0_86, %c0_87] : memref<2x64x128xf32, #tpu.memory_space<vmem>>, vector<1x64x128xf32>
    %122 = vector.shape_cast %121 : vector<1x64x128xf32> to vector<64x128xf32>
    %cst_88 = arith.constant dense<0.000000e+00> : vector<8x128xf32>
    %123 = tpu.matmul %120, %122, %cst_88 {dimension_numbers = #tpu.dot_dimension_numbers<[1], [0], [0], [1], [0, 0, 1, 1], [], []>} : vector<8x64xf32>, vector<64x128xf32>, vector<8x128xf32> -> vector<8x128xf32>
    %c1_89 = arith.constant 1 : index
    %c0_90 = arith.constant 0 : index
    %c0_91 = arith.constant 0 : index
    %124 = vector.load %arg5[%c1_89, %c0_90, %c0_91] : memref<2x1x128xf32, #tpu.memory_space<vmem>>, vector<1x1x128xf32>
    %125 = vector.shape_cast %124 : vector<1x1x128xf32> to vector<1x128xf32>
    %126 = vector.broadcast %125 : vector<1x128xf32> to vector<8x128xf32>
    %127 = arith.addf %123, %126 : vector<8x128xf32>
    %128 = vector.extract_strided_slice %127 {offsets = [0, 0], sizes = [8, 32], strides = [1, 1]} : vector<8x128xf32> to vector<8x32xf32>
    %129 = arith.negf %128 : vector<8x32xf32>
    %130 = math.exp %129 : vector<8x32xf32>
    %cst_92 = arith.constant 1.000000e+00 : f32
    %131 = vector.broadcast %cst_92 : f32 to vector<8x32xf32>
    %132 = arith.addf %131, %130 : vector<8x32xf32>
    %133 = arith.divf %131, %132 : vector<8x32xf32>
    %134 = vector.extract_strided_slice %127 {offsets = [0, 32], sizes = [8, 32], strides = [1, 1]} : vector<8x128xf32> to vector<8x32xf32>
    %135 = arith.negf %134 : vector<8x32xf32>
    %136 = math.exp %135 : vector<8x32xf32>
    %cst_93 = arith.constant 1.000000e+00 : f32
    %137 = vector.broadcast %cst_93 : f32 to vector<8x32xf32>
    %138 = arith.addf %137, %136 : vector<8x32xf32>
    %139 = arith.divf %137, %138 : vector<8x32xf32>
    %140 = vector.extract_strided_slice %127 {offsets = [0, 64], sizes = [8, 32], strides = [1, 1]} : vector<8x128xf32> to vector<8x32xf32>
    %141 = math.tanh %140 : vector<8x32xf32>
    %142 = vector.extract_strided_slice %127 {offsets = [0, 96], sizes = [8, 32], strides = [1, 1]} : vector<8x128xf32> to vector<8x32xf32>
    %143 = arith.negf %142 : vector<8x32xf32>
    %144 = math.exp %143 : vector<8x32xf32>
    %cst_94 = arith.constant 1.000000e+00 : f32
    %145 = vector.broadcast %cst_94 : f32 to vector<8x32xf32>
    %146 = arith.addf %145, %144 : vector<8x32xf32>
    %147 = arith.divf %145, %146 : vector<8x32xf32>
    %148 = arith.mulf %139, %119 : vector<8x32xf32>
    %149 = arith.mulf %133, %141 : vector<8x32xf32>
    %150 = arith.addf %148, %149 : vector<8x32xf32>
    %151 = math.tanh %150 : vector<8x32xf32>
    %152 = arith.mulf %147, %151 : vector<8x32xf32>
    %c1_95 = arith.constant 1 : index
    %c0_96 = arith.constant 0 : index
    %c0_97 = arith.constant 0 : index
    %153 = vector.load %arg9[%c1_95, %c0_96, %c0_97] : memref<2x8x32xf32, #tpu.memory_space<vmem>>, vector<1x8x32xf32>
    %154 = vector.shape_cast %153 : vector<1x8x32xf32> to vector<8x32xf32>
    %155 = vector.shape_cast %152 : vector<8x32xf32> to vector<1x8x32xf32>
    tpu.vector_store %arg9[%c1_95, %c0_96, %c0_97], %155 {strides = array<i32>} : memref<2x8x32xf32, #tpu.memory_space<vmem>>, vector<1x8x32xf32>,
    %c1_98 = arith.constant 1 : index
    %c0_99 = arith.constant 0 : index
    %c0_100 = arith.constant 0 : index
    %156 = vector.load %arg10[%c1_98, %c0_99, %c0_100] : memref<2x8x32xf32, #tpu.memory_space<vmem>>, vector<1x8x32xf32>
    %157 = vector.shape_cast %156 : vector<1x8x32xf32> to vector<8x32xf32>
    %158 = vector.shape_cast %150 : vector<8x32xf32> to vector<1x8x32xf32>
    tpu.vector_store %arg10[%c1_98, %c0_99, %c0_100], %158 {strides = array<i32>} : memref<2x8x32xf32, #tpu.memory_space<vmem>>, vector<1x8x32xf32>,
    %c0_101 = arith.constant 0 : index
    %c0_102 = arith.constant 0 : index
    %159 = vector.load %arg6[%c0_101, %c0_102] : memref<32x128xf32, #tpu.memory_space<vmem>>, vector<32x128xf32>
    %cst_103 = arith.constant dense<0.000000e+00> : vector<8x128xf32>
    %160 = tpu.matmul %152, %159, %cst_103 {dimension_numbers = #tpu.dot_dimension_numbers<[1], [0], [0], [1], [0, 0, 1, 1], [], []>} : vector<8x32xf32>, vector<32x128xf32>, vector<8x128xf32> -> vector<8x128xf32>
    %c0_104 = arith.constant 0 : index
    %c0_105 = arith.constant 0 : index
    %161 = vector.load %arg7[%c0_104, %c0_105] : memref<1x128xf32, #tpu.memory_space<vmem>>, vector<1x128xf32>
    %162 = vector.broadcast %161 : vector<1x128xf32> to vector<8x128xf32>
    %163 = arith.addf %160, %162 : vector<8x128xf32>
    %c0_106 = arith.constant 0 : index
    %c0_107 = arith.constant 0 : index
    %164 = vector.load %arg8[%c0_106, %c0_107] : memref<8x128xf32, #tpu.memory_space<vmem>>, vector<8x128xf32>
    tpu.vector_store %arg8[%c0_106, %c0_107], %163 {strides = array<i32>} : memref<8x128xf32, #tpu.memory_space<vmem>>, vector<8x128xf32>,
    return
  }
}

</mosaic_0001>

<bundles_post_ra>
// kernel: tpu_custom_call.1
= control target key start
LH: loop header
LB: loop body
LE: loop exit
PB: predicated region body
PF: predicated region fallthrough
CT: control target
= control target key end

     0   :  { %16 = vsyncpa [#allocation7], 0  ;;  %s1630_s0 = inlined_call_operand.vmem [shape: s32[8], index: 0, kind: input, shape index: {}]   ;;  %s1631_s1 = inlined_call_operand.vmem [shape: f32[100,32], index: 1, kind: input, shape index: {}]   ;;  %s1632_s2 = inlined_call_operand.hbm [shape: f32[2,8,32], index: 2, kind: input, shape index: {}, may-alias: {2,9}]   ;;  %s1633_s3 = inlined_call_operand.hbm [shape: f32[2,8,32], index: 3, kind: input, shape index: {}, may-alias: {3,10}]   ;;  %s1634_s4 = inlined_call_operand.vmem [shape: f32[2,64,128], index: 4, kind: input, shape index: {}]   ;;  %s1635_s5 = inlined_call_operand.hbm [shape: f32[2,1,128], index: 5, kind: input, shape index: {}]   ;;  %s1636_s6 = inlined_call_operand.vmem [shape: f32[32,128], index: 6, kind: input, shape index: {}]   ;;  %s1637_s7 = inlined_call_operand.hbm [shape: f32[1,128], index: 7, kind: input, shape index: {}]   ;;  %s1638_s8 = inlined_call_operand.hbm [shape: f32[8,128], index: 8, kind: output, shape index: {0}]   ;;  %s1639_s9 = inlined_call_operand.hbm [shape: f32[2,8,32], index: 9, kind: output, shape index: {1}, may-alias: {2,9}]   ;;  %s1640_s10 = inlined_call_operand.hbm [shape: f32[2,8,32], index: 10, kind: output, shape index: {2}, may-alias: {3,10}]  }
   0x1   :  { %17 = vsyncpa [#allocation5], 0 }
   0x2   :  { %18 = vsyncpa [#allocation10], 0 }
   0x3   :  { %19 = vsyncpa [#allocation13], 0 }
   0x4   :  { %20 = vsyncpa [#allocation6], 0 }
   0x5   :  { %21 = vsyncpa [#allocation16], 0  ;;  %s28_s15 = sshll.u32 %s1630_s0, 4  ;;  %s1387_s16 = smov [#allocation9]   ;;  %s29_s15 = int_to_ptr.vmem [resolvable:$true] %s28_s15 }
   0x6   :  { %s49_s17 = sshll.u32 %s1387_s16, 4  ;;  %s50_s17 = int_to_ptr.vmem [resolvable:$true] %s49_s17 }
   0x7   :  { %s1215_s18 = scalar_lea.vmem %s50_s17, 256  ;;  %p1220_p1 = scmp.lt.s32.totalorder %s50_s17, %s50_s17 }
   0x8   :  { %p1216_p0 = scmp.ne.s32.totalorder %s50_s17, %s1215_s18  ;;  %p1221_p2 = scmp.lt.s32.totalorder %s1215_s18, %s1215_s18 }
   0xa   :  { %p1222_p3 = por %p1221_p2, %p1220_p1 }
   0xc   :  { %p1223_p4 = pnand %p1222_p3, %p1216_p0 }
   0xe   :  { %1226 = shalt.err (!%p1223_p4)
}
   0xf   :  { %s1388_s19 = smov 128   ;;  %s1389_s20 = smov 8  }
  0x10   :  { %55 = dma.hbm_to_vmem [thread:$0]  %s1633_s3, 256, %s50_s17, [#allocation10], %s1388_s19, %s1388_s19, %s1389_s20  }
  0x11   :  { %s1227_s0 = scalar_lea.vmem %s29_s15, 16  ;;  %p1232_p6 = scmp.lt.s32.totalorder %s29_s15, %s29_s15 }
  0x12   :  { %p1228_p5 = scmp.ne.s32.totalorder %s29_s15, %s1227_s0  ;;  %p1233_p7 = scmp.lt.s32.totalorder %s1227_s0, %s1227_s0 }
  0x14   :  { %p1234_p8 = por %p1233_p7, %p1232_p6 }
  0x16   :  { %p1235_p9 = pnand %p1234_p8, %p1228_p5 }
  0x18   :  { %1238 = shalt.err (!%p1235_p9)
}
  0x19   :  { %s1390_s23 = smov [#allocation4]   ;;  %s1391_s24 = smov [#allocation8]  }
  0x1a   :  { %31 = dma.vmem_to_smem %s29_s15, 16, %s1390_s23, [#allocation7]  }
  0x1b   :  { %s37_s25 = sshll.u32 %s1391_s24, 4  ;;  %s1392_s26 = smov [#allocation11]   ;;  %s38_s25 = int_to_ptr.vmem [resolvable:$true] %s37_s25 }
  0x1c   :  { %s63_s27 = sshll.u32 %s1392_s26, 4  ;;  %s1247_s28 = scalar_lea.vmem %s38_s25, 256  ;;  %s64_s27 = int_to_ptr.vmem [resolvable:$true] %s63_s27 }
  0x1d   :  { %p1248_p10 = scmp.ne.s32.totalorder %s38_s25, %s1247_s28  ;;  %p1252_p11 = scmp.lt.s32.totalorder %s38_s25, %s38_s25 }
  0x1e   :  { %p1253_p12 = scmp.lt.s32.totalorder %s1247_s28, %s1247_s28 }
  0x20   :  { %p1254_p13 = por %p1253_p12, %p1252_p11 }
  0x22   :  { %p1255_p0 = pnand %p1254_p13, %p1248_p10 }
  0x24   :  { %1258 = shalt.err (!%p1255_p0)
}
  0x25   :  { %43 = dma.hbm_to_vmem [thread:$0]  %s1632_s2, 256, %s38_s25, [#allocation5], %s1388_s19, %s1388_s19, %s1389_s20  }
  0x26   :  { %s1267_s30 = scalar_lea.vmem %s64_s27, 32  ;;  %p1272_p2 = scmp.lt.s32.totalorder %s64_s27, %s64_s27 }
  0x27   :  { %p1268_p1 = scmp.ne.s32.totalorder %s64_s27, %s1267_s30  ;;  %p1273_p3 = scmp.lt.s32.totalorder %s1267_s30, %s1267_s30 }
  0x29   :  { %p1274_p4 = por %p1273_p3, %p1272_p2 }
  0x2b   :  { %p1275_p5 = pnand %p1274_p4, %p1268_p1 }
  0x2d   :  { %1278 = shalt.err (!%p1275_p5)
}
  0x2e   :  { %s1393_s11 = smov 16   ;;  %s1394_s12 = smov 1  }
  0x2f   :  { %69 = dma.hbm_to_vmem [thread:$0]  %s1635_s5, 32, %s64_s27, [#allocation10], %s1393_s11, %s1393_s11, %s1394_s12  }
  0x30   :  { %s1395_s15 = smov [#allocation12]  }
  0x31   :  { %s78_s16 = sshll.u32 %s1395_s15, 4  ;;  %s79_s16 = int_to_ptr.vmem [resolvable:$true] %s78_s16 }
  0x32   :  { %s1287_s17 = scalar_lea.vmem %s79_s16, 16  ;;  %s1291_s18 = scalar_lea.vmem %s79_s16, 32 }
  0x33   :  { %p1288_p6 = scmp.ne.s32.totalorder %s79_s16, %s1287_s17  ;;  %p1292_p7 = scmp.lt.s32.totalorder %s79_s16, %s79_s16 }
  0x34   :  { %p1293_p8 = scmp.lt.s32.totalorder %s1291_s18, %s1287_s17 }
  0x36   :  { %p1294_p9 = por %p1293_p8, %p1292_p7 }
  0x38   :  { %p1295_p10 = pnand %p1294_p9, %p1288_p6 }
  0x3a   :  { %1298 = shalt.err (!%p1295_p10)
}
  0x3b   :  { %81 = dma.hbm_to_vmem [thread:$0]  %s1637_s7, 16, %s79_s16, [#allocation13]  }
  0x3c   :  { %1359 = dma.done.wait [#allocation7], 16  }
  0x3d   :  { %1360 = vsyncadd [#allocation7], 4294967280 }
  0x3e   :  { %1361 = dma.done.wait [#allocation5], 256  }
  0x3f   :  { %1362 = vsyncadd [#allocation5], 4294967040 }
  0x40   :  { %1363 = dma.done.wait [#allocation10], 288  }
  0x41   :  { %1364 = vsyncadd [#allocation10], 4294967008 }
  0x42   :  { %1365 = dma.done.wait [#allocation13], 16  }
  0x43   :  { %1366 = vsyncadd [#allocation13], 4294967280 }
  0x44   :  { %97 = sfence }
  0x45   :  { %s98_s5 = sld [smem:[#allocation4]] }
  0x4b   :  { %s99_s23 = scalar_lea.vmem %s1631_s1, %s98_s5 }
  0x4c   :  { %v118_v0 = vld [vmem:[%s99_s23] sm:$0x1] }
  0x4d   :  { %119 = vst [vmem:[#allocation2] sm:$0x1] %v118_v0 }
  0x4e   :  { %145 = vsyncadd [#allocation3], 16  ;;  %s1071_s24 = sld [smem:[#allocation4 + $0x1]] }
  0x54   :  { %s147_s26 = scalar_lea.vmem %s1631_s1, %s1071_s24 }
  0x55   :  { %v168_v1 = vld [vmem:[%s147_s26] sm:$0x1] }
  0x56   :  { %169 = vst [vmem:[#allocation2 + $0x1] sm:$0x1] %v168_v1 }
  0x57   :  { %195 = vsyncadd [#allocation3 + $0x1], 16  ;;  %s1072_s27 = sld [smem:[#allocation4 + $0x2]] }
  0x5d   :  { %s197_s29 = scalar_lea.vmem %s1631_s1, %s1072_s27 }
  0x5e   :  { %v218_v2 = vld [vmem:[%s197_s29] sm:$0x1] }
  0x5f   :  { %219 = vst [vmem:[#allocation2 + $0x2] sm:$0x1] %v218_v2 }
  0x60   :  { %245 = vsyncadd [#allocation3 + $0x2], 16  ;;  %s1073_s30 = sld [smem:[#allocation4 + $0x3]] }
  0x66   :  { %s247_s13 = scalar_lea.vmem %s1631_s1, %s1073_s30 }
  0x67   :  { %v268_v3 = vld [vmem:[%s247_s13] sm:$0x1] }
  0x68   :  { %269 = vst [vmem:[#allocation2 + $0x3] sm:$0x1] %v268_v3 }
  0x69   :  { %295 = vsyncadd [#allocation3 + $0x3], 16  ;;  %s1074_s14 = sld [smem:[#allocation4 + $0x4]] }
  0x6f   :  { %s297_s17 = scalar_lea.vmem %s1631_s1, %s1074_s14 }
  0x70   :  { %v318_v4 = vld [vmem:[%s297_s17] sm:$0x1] }
  0x71   :  { %319 = vst [vmem:[#allocation2 + $0x4] sm:$0x1] %v318_v4 }
  0x72   :  { %345 = vsyncadd [#allocation3 + $0x4], 16  ;;  %s1075_s18 = sld [smem:[#allocation4 + $0x5]] }
  0x78   :  { %s347_s5 = scalar_lea.vmem %s1631_s1, %s1075_s18 }
  0x79   :  { %v368_v5 = vld [vmem:[%s347_s5] sm:$0x1] }
  0x7a   :  { %369 = vst [vmem:[#allocation2 + $0x5] sm:$0x1] %v368_v5 }
  0x7b   :  { %395 = vsyncadd [#allocation3 + $0x5], 16  ;;  %s1076_s22 = sld [smem:[#allocation4 + $0x6]] }
  0x81   :  { %s397_s24 = scalar_lea.vmem %s1631_s1, %s1076_s22 }
  0x82   :  { %v418_v6 = vld [vmem:[%s397_s24] sm:$0x1] }
  0x83   :  { %419 = vst [vmem:[#allocation2 + $0x6] sm:$0x1] %v418_v6 }
  0x84   :  { %445 = vsyncadd [#allocation3 + $0x6], 16  ;;  %s1077_s25 = sld [smem:[#allocation4 + $0x7]] }
  0x8a   :  { %s447_s27 = scalar_lea.vmem %s1631_s1, %s1077_s25 }
  0x8b   :  { %v468_v7 = vld [vmem:[%s447_s27] sm:$0x1] }
  0x8c   :  { %469 = vst [vmem:[#allocation2 + $0x7] sm:$0x1] %v468_v7 }
  0x8d   :  { %495 = vsyncadd [#allocation3 + $0x7], 16 }
  0x8e   :  { %1367 = dma.done.wait [#allocation3], 16 }
  0x8f   :  { %1368 = vsyncadd [#allocation3], 4294967280 }
  0x90   :  { %1369 = dma.done.wait [#allocation3 + $0x1], 16 }
  0x91   :  { %1370 = vsyncadd [#allocation3 + $0x1], 4294967280 }
  0x92   :  { %1371 = dma.done.wait [#allocation3 + $0x2], 16 }
  0x93   :  { %1372 = vsyncadd [#allocation3 + $0x2], 4294967280 }
  0x94   :  { %1373 = dma.done.wait [#allocation3 + $0x3], 16 }
  0x95   :  { %1374 = vsyncadd [#allocation3 + $0x3], 4294967280 }
  0x96   :  { %1375 = dma.done.wait [#allocation3 + $0x4], 16 }
  0x97   :  { %1376 = vsyncadd [#allocation3 + $0x4], 4294967280 }
  0x98   :  { %1377 = dma.done.wait [#allocation3 + $0x5], 16 }
  0x99   :  { %1378 = vsyncadd [#allocation3 + $0x5], 4294967280 }
  0x9a   :  { %1379 = dma.done.wait [#allocation3 + $0x6], 16 }
  0x9b   :  { %1380 = vsyncadd [#allocation3 + $0x6], 4294967280 }
  0x9c   :  { %1381 = dma.done.wait [#allocation3 + $0x7], 16 }
  0x9d   :  { %1382 = vsyncadd [#allocation3 + $0x7], 4294967280  ;;  %v1396_v8 = vmov 0.0   ;;  %vm1397_vm0 = vmmov 0   ;;  %v514_v9 = vld [vmem:[#allocation8] sm:$0xff]  ;;  %v529_v10 = vld [vmem:[%s1634_s4 + $0x38] sm:$0xff] }
  0x9e   :  { %1125 = vmatprep.subr.mxu0 %v1396_v8  ;;  %1141 = vmatprep.mubr.msk.f32.mxu0 %vm1397_vm0, %v1396_v8  ;;  %v528_v11 = vld [vmem:[%s1634_s4 + $0x30] sm:$0xff]  ;;  %s1398_s30 = smov 32   ;;  %v527_v12 = vld [vmem:[%s1634_s4 + $0x28] sm:$0xff]  ;;  %v515_v13 = vld [vmem:[#allocation9] sm:$0xff]  ;;  %vm520_vm1 = vcmask 261120   ;;  %vm537_vm2 = vcmask 523264  }
  0x9f   :  { %1144 = vmatprep.subr.mxu1 %v1396_v8  ;;  %1160 = vmatprep.mubr.msk.f32.mxu1 %vm1397_vm0, %v1396_v8  ;;  %v526_v14 = vld [vmem:[%s1634_s4 + $0x20] sm:$0xff]  ;;  %v525_v15 = vld [vmem:[%s1634_s4 + $0x18] sm:$0xff]  ;;  %v524_v16 = vld [vmem:[%s1634_s4 + $0x10] sm:$0xff]  ;;  %s1399_s0 = smov 64   ;;  %s1400_s24 = smov 96  }
  0xa0   :  { %517 = vrot.lane.b32.xlu0 %v514_v9, %s1398_s30  ;;  %1126 = vmatpush3.msra.mxu0 %v529_v10  ;;  %v523_v17 = vld [vmem:[%s1634_s4 + $0x8] sm:$0xff]  ;;  %v522_v18 = vld [vmem:[%s1634_s4] sm:$0xff]  ;;  %v1088_v37 = vld [vmem:[%s1634_s4 + $0x78] sm:$0xff] }
  0xa1   :  { %1127 = vmatprep.subr.mxu0 %v1396_v8  ;;  %619 = vrot.lane.b32.xlu1 %v515_v13, %s1398_s30  ;;  %v513_v19 = vld [vmem:[#allocation2] sm:$0xff]  ;;  %v1078_v22 = vld [vmem:[#allocation11] ss:$0 sm:$0xff]  ;;  %v1087_v38 = vld [vmem:[%s1634_s4 + $0x70] sm:$0xff] }
  0xa2   :  { %1128 = vmatpush3.msra.mxu0 %v528_v11  ;;  %1145 = vmatpush3.msra.mxu1 %v1088_v37  ;;  %v1086_v39 = vld [vmem:[%s1634_s4 + $0x68] sm:$0xff]  ;;  %v1085_v40 = vld [vmem:[%s1634_s4 + $0x60] sm:$0xff]  ;;  %v1084_v41 = vld [vmem:[%s1634_s4 + $0x58] sm:$0xff] }
  0xa3   :  { %1129 = vmatprep.subr.mxu0 %v1396_v8  ;;  %1146 = vmatprep.subr.mxu1 %v1396_v8  ;;  %v1083_v42 = vld [vmem:[%s1634_s4 + $0x50] sm:$0xff]  ;;  %v1082_v44 = vld [vmem:[%s1634_s4 + $0x48] sm:$0xff]  ;;  %v1081_v46 = vld [vmem:[%s1634_s4 + $0x40] sm:$0xff] }
  0xa4   :  { %1130 = vmatpush3.msra.mxu0 %v527_v12  ;;  %1147 = vmatpush3.msra.mxu1 %v1087_v38  ;;  %v650_v45 = vld [vmem:[#allocation8 + $0x8] sm:$0xff]  ;;  %v652_v47 = vld [vmem:[#allocation9 + $0x8] sm:$0xff]  ;;  %v1089_v53 = vld [vmem:[#allocation11 + $0x1] ss:$0 sm:$0xff] }
  0xa5   :  { %1131 = vmatprep.subr.mxu0 %v1396_v8  ;;  %1148 = vmatprep.subr.mxu1 %v1396_v8  ;;  %v791_v4 = vld [vmem:[%s1636_s6 + $0x18] sm:$0xff]  ;;  %v790_v5 = vld [vmem:[%s1636_s6 + $0x10] sm:$0xff]  ;;  %v789_v6 = vld [vmem:[%s1636_s6 + $0x8] sm:$0xff] }
  0xa6   :  { %1132 = vmatpush3.msra.mxu0 %v526_v14  ;;  %1149 = vmatpush3.msra.mxu1 %v1086_v39  ;;  %v788_v7 = vld [vmem:[%s1636_s6] sm:$0xff]  ;;  %s1401_s6 = smov [#allocation15]  }
  0xa7   :  { %1133 = vmatprep.subr.mxu0 %v1396_v8  ;;  %1150 = vmatprep.subr.mxu1 %v1396_v8 }
  0xa8   :  { %1134 = vmatpush3.msra.mxu0 %v525_v15  ;;  %1151 = vmatpush3.msra.mxu1 %v1085_v40 }
  0xa9   :  { %1135 = vmatprep.subr.mxu0 %v1396_v8  ;;  %1152 = vmatprep.subr.mxu1 %v1396_v8 }
  0xaa   :  { %1136 = vmatpush3.msra.mxu0 %v524_v16  ;;  %1153 = vmatpush3.msra.mxu1 %v1084_v41 }
  0xab   :  { %1137 = vmatprep.subr.mxu0 %v1396_v8  ;;  %1154 = vmatprep.subr.mxu1 %v1396_v8 }
  0xac   :  { %1138 = vmatpush3.msra.mxu0 %v523_v17  ;;  %1155 = vmatpush3.msra.mxu1 %v1083_v42 }
  0xad   :  { %1139 = vmatprep.subr.mxu0 %v1396_v8  ;;  %1156 = vmatprep.subr.mxu1 %v1396_v8 }
  0xae   :  { %1140 = vmatpush3.msra.mxu0 %v522_v18  ;;  %1157 = vmatpush3.msra.mxu1 %v1082_v44 }
  0xaf   :  { %1163 = vmatprep.subr.mxu0 %v1396_v8  ;;  %1158 = vmatprep.subr.mxu1 %v1396_v8 }
  0xb0   :  { %1159 = vmatpush3.msra.mxu1 %v1081_v46 }
 0x112   :  { %v518_v20 = vpop.permute.xlu0 %517 }
 0x113   :  { %v521_v21 = vsel %vm520_vm1, %v513_v19, %v518_v20  ;;  %v620_v33 = vpop.permute.xlu1 %619 }
 0x114   :  { %1142 = vmatmul.mubr.msk.f32.vlgmr.msra.gmra.mxu0 %vm537_vm2, %v521_v21 }
 0x115   :  { %1171 = vmatprep.mubr.msk.f32.mxu0 %vm1397_vm0, %v1396_v8  ;;  %1164 = vmatpush3.msra.mxu0 %v791_v4 }
 0x116   :  { %1165 = vmatprep.subr.mxu0 %v1396_v8 }
 0x117   :  { %1166 = vmatpush3.msra.mxu0 %v790_v5 }
 0x118   :  { %1167 = vmatprep.subr.mxu0 %v1396_v8 }
 0x119   :  { %1168 = vmatpush3.msra.mxu0 %v789_v6 }
 0x11a   :  { %1169 = vmatprep.subr.mxu0 %v1396_v8 }
 0x11b   :  { %1170 = vmatpush3.msra.mxu0 %v788_v7 }
 0x1d4   :  { %v607_v23 = vpop.f32.mrf.mxu0 }
 0x1d5   :  { %v608_v24 = vadd.f32 %v1078_v22, %v607_v23 }
 0x1d6   :  { %v1143_v25 = vpop.f32.mrf.mxu0 }
 0x1d7   :  { %1191 = vtanh.f32 %v608_v24  ;;  %v1080_v27 = vmul.f32 -1.442695, %v608_v24 }
 0x1d9   :  { %1193 = vpow2.f32 %v1080_v27 }
 0x1e4   :  { %v1192_v26 = vpop.eup %1191 }
 0x1e5   :  { %624 = vrot.lane.b32.xlu0 %v1192_v26, %s1399_s0 }
 0x1e6   :  { %v1194_v28 = vpop.eup %1193 }
 0x1e7   :  { %v614_v29 = vadd.f32 1.0, %v1194_v28 }
 0x1e9   :  { %1195 = vrcp.f32 %v614_v29 }
 0x1f6   :  { %v1196_v30 = vpop.eup %1195 }
 0x1f7   :  { %v622_v34 = vmul.f32 %v1196_v30, %v620_v33 }
 0x257   :  { %v625_v31 = vpop.permute.xlu0 %624 }
 0x258   :  { %v627_v32 = vmul.f32 %v1196_v30, %v625_v31 }
 0x25a   :  { %629 = vrot.lane.b32.xlu1 %v627_v32, %s1398_s30 }
 0x2cc   :  { %v630_v35 = vpop.permute.xlu1 %629 }
 0x2cd   :  { %v1550_v36 = vadd.f32 %v630_v35, %v622_v34 }
 0x2cf   :  { %1197 = vtanh.f32 %v1550_v36 }
 0x2dc   :  { %v1198_v43 = vpop.eup %1197 }
 0x2dd   :  { %635 = vrot.lane.b32.xlu0 %v1198_v43, %s1399_s0 }
 0x2e1   :  { %654 = vrot.lane.b32.xlu0 %v650_v45, %s1398_s30 }
 0x2e5   :  { %756 = vrot.lane.b32.xlu0 %v652_v47, %s1398_s30 }
 0x34f   :  { %v636_v48 = vpop.permute.xlu0 %635 }
 0x350   :  { %v638_v49 = vmul.f32 %v1196_v30, %v636_v48 }
 0x352   :  { %640 = vrot.lane.b32.xlu1 %v638_v49, %s1398_s30 }
 0x353   :  { %v655_v50 = vpop.permute.xlu0 %654 }
 0x357   :  { %v757_v0 = vpop.permute.xlu0 %756 }
 0x3c4   :  { %v641_v51 = vpop.permute.xlu1 %640 }
 0x3c5   :  { %643 = vst.msk [vmem:[#allocation15] sm:$0xff] %vm520_vm1, %v641_v51  ;;  %v657_v52 = vsel %vm520_vm1, %v641_v51, %v655_v50 }
 0x3c6   :  { %1161 = vmatmul.mubr.msk.f32.vlgmr.msra.gmra.mxu1 %vm537_vm2, %v657_v52 }
 0x486   :  { %v744_v54 = vpop.f32.mrf.mxu1 }
 0x487   :  { %v745_v55 = vadd.f32 %v1089_v53, %v744_v54 }
 0x488   :  { %v1162_v56 = vpop.f32.mrf.mxu1 }
 0x489   :  { %1199 = vtanh.f32 %v745_v55  ;;  %v1091_v58 = vmul.f32 -1.442695, %v745_v55 }
 0x48b   :  { %1201 = vpow2.f32 %v1091_v58 }
 0x496   :  { %v1200_v57 = vpop.eup %1199 }
 0x497   :  { %761 = vrot.lane.b32.xlu1 %v1200_v57, %s1399_s0 }
 0x498   :  { %v1202_v59 = vpop.eup %1201 }
 0x499   :  { %v751_v60 = vadd.f32 1.0, %v1202_v59 }
 0x49b   :  { %1203 = vrcp.f32 %v751_v60 }
 0x4a8   :  { %v1204_v61 = vpop.eup %1203 }
 0x4a9   :  { %v759_v1 = vmul.f32 %v1204_v61, %v757_v0 }
 0x509   :  { %v762_v62 = vpop.permute.xlu1 %761 }
 0x50a   :  { %v764_v63 = vmul.f32 %v1204_v61, %v762_v62 }
 0x50c   :  { %766 = vrot.lane.b32.xlu1 %v764_v63, %s1398_s30 }
 0x57e   :  { %v767_v2 = vpop.permute.xlu1 %766 }
 0x57f   :  { %v769_v3 = vadd.f32 %v767_v2, %v759_v1 }
 0x581   :  { %1205 = vtanh.f32 %v769_v3 }
 0x58e   :  { %v1206_v9 = vpop.eup %1205 }
 0x58f   :  { %772 = vrot.lane.b32.xlu0 %v1206_v9, %s1399_s0  ;;  %s887_s0 = sshll.u32 %s1401_s6, 4  ;;  %s888_s0 = int_to_ptr.vmem [resolvable:$true] %s887_s0 }
 0x590   :  { %s1299_s25 = scalar_lea.vmem %s888_s0, 256  ;;  %p1304_p12 = scmp.lt.s32.totalorder %s888_s0, %s888_s0 }
 0x591   :  { %p1300_p11 = scmp.ne.s32.totalorder %s888_s0, %s1299_s25  ;;  %p1305_p13 = scmp.lt.s32.totalorder %s1299_s25, %s1299_s25 }
 0x593   :  { %645 = vrot.lane.b32.xlu0 %v1550_v36, %s1400_s24  ;;  %p1306_p0 = por %p1305_p13, %p1304_p12 }
 0x595   :  { %p1307_p1 = pnand %p1306_p0, %p1300_p11 }
 0x601   :  { %v773_v10 = vpop.permute.xlu0 %772 }
 0x602   :  { %v775_v11 = vmul.f32 %v1204_v61, %v773_v10 }
 0x604   :  { %777 = vrot.lane.b32.xlu1 %v775_v11, %s1398_s30 }
 0x605   :  { %v646_v12 = vpop.permute.xlu0 %645 }
 0x606   :  { %648 = vst.msk [vmem:[#allocation17] sm:$0xff] %vm520_vm1, %v646_v12 }
 0x608   :  { %783 = vrot.lane.b32.xlu1 %v769_v3, %s1400_s24 }
 0x676   :  { %v778_v13 = vpop.permute.xlu1 %777 }
 0x677   :  { %781 = vst.msk [vmem:[#allocation15 + $0x8] sm:$0xff] %vm520_vm1, %v778_v13  ;;  %1172 = vmatmul.mubr.msk.f32.vlgmr.msra.gmra.mxu0 %vm520_vm1, %v778_v13 }
 0x67a   :  { %v784_v8 = vpop.permute.xlu1 %783 }
 0x67b   :  { %787 = vst.msk [vmem:[#allocation17 + $0x8] sm:$0xff] %vm520_vm1, %v784_v8 }
 0x67c   :  { %1310 = shalt.err (!%p1307_p1)
}
 0x67d   :  { %893 = dma.vmem_to_hbm [thread:$0]  %s888_s0, 256, %s1639_s9, [#allocation16], %s1388_s19, %s1388_s19, %s1389_s20  }
 0x67e   :  { %s1402_s26 = smov [#allocation17]  }
 0x67f   :  { %s899_s27 = sshll.u32 %s1402_s26, 4  ;;  %s900_s27 = int_to_ptr.vmem [resolvable:$true] %s899_s27 }
 0x680   :  { %s1319_s1 = scalar_lea.vmem %s900_s27, 256  ;;  %p1324_p3 = scmp.lt.s32.totalorder %s900_s27, %s900_s27 }
 0x681   :  { %p1320_p2 = scmp.ne.s32.totalorder %s900_s27, %s1319_s1  ;;  %p1325_p4 = scmp.lt.s32.totalorder %s1319_s1, %s1319_s1 }
 0x683   :  { %p1326_p5 = por %p1325_p4, %p1324_p3 }
 0x685   :  { %p1327_p6 = pnand %p1326_p5, %p1320_p2 }
 0x687   :  { %1330 = shalt.err (!%p1327_p6)
}
 0x688   :  { %905 = dma.vmem_to_hbm [thread:$0]  %s900_s27, 256, %s1640_s10, [#allocation16], %s1388_s19, %s1388_s19, %s1389_s20   ;;  %v1092_v14 = vld [vmem:[#allocation12] ss:$0 sm:$0xff] }
 0x689   :  { %s1403_s29 = smov [#allocation14]  }
 0x68a   :  { %s878_s9 = sshll.u32 %s1403_s29, 4  ;;  %s879_s9 = int_to_ptr.vmem [resolvable:$true] %s878_s9 }
 0x68b   :  { %s1339_s11 = scalar_lea.vmem %s879_s9, 128  ;;  %p1344_p8 = scmp.lt.s32.totalorder %s879_s9, %s879_s9 }
 0x68c   :  { %p1340_p7 = scmp.ne.s32.totalorder %s879_s9, %s1339_s11  ;;  %p1345_p9 = scmp.lt.s32.totalorder %s1339_s11, %s1339_s11 }
 0x68e   :  { %p1346_p10 = por %p1345_p9, %p1344_p8 }
 0x690   :  { %p1347_p11 = pnand %p1346_p10, %p1340_p7 }
 0x737   :  { %v867_v15 = vpop.f32.mrf.mxu0 }
 0x738   :  { %v868_v16 = vadd.f32 %v1092_v14, %v867_v15 }
 0x739   :  { %v1173_v17 = vpop.f32.mrf.mxu0 }
 0x73a   :  { %871 = vst [vmem:[#allocation14] sm:$0xff] %v868_v16 }
 0x73b   :  { %1350 = shalt.err (!%p1347_p11)
}
 0x73c   :  { %881 = dma.vmem_to_hbm [thread:$0]  %s879_s9, 128, %s1638_s8, [#allocation6]  }
 0x73d   :  { %1383 = dma.done.wait [#allocation6], 128  }
 0x73e   :  { %1384 = vsyncadd [#allocation6], 4294967168 }
 0x73f   :  { %1385 = dma.done.wait [#allocation16], 512  }
 0x740   :  { %1386 = vsyncadd [#allocation16], 4294966784 }
 0x741   :  { %915 = vsyncpa [#allocation5], 1 }
 0x742   :  { %916 = vsyncpa [#allocation10], 1 }
 0x743   :  { %917 = vsyncpa [#allocation13], 1 }
 0x744   :  { %918 = vsyncpa [#allocation6], 1 }
 0x745   :  { %919 = vsyncpa [#allocation16], 1 }
 0x746   :  { %920 = vsyncpa [#allocation7], 1 }
 0x747   :  { %921 = vsyncmov [#allocation3] }
 0x74a   :  { %s922_s10 = vpop.sfrf %921 }
 0x74b   :  { %p1094_p12 = scmp.ne.s32.totalorder %s922_s10, 0 }
 0x74d   :  { %926 = shalt.err (%p1094_p12)  }
 0x74e   :  { %928 = vsyncmov [#allocation3 + $0x1] }
 0x751   :  { %s929_s19 = vpop.sfrf %928 }
 0x752   :  { %p1095_p13 = scmp.ne.s32.totalorder %s929_s19, 0 }
 0x754   :  { %933 = shalt.err (%p1095_p13)  }
 0x755   :  { %935 = vsyncmov [#allocation3 + $0x2] }
 0x758   :  { %s936_s8 = vpop.sfrf %935 }
 0x759   :  { %p1096_p0 = scmp.ne.s32.totalorder %s936_s8, 0 }
 0x75b   :  { %940 = shalt.err (%p1096_p0)  }
 0x75c   :  { %942 = vsyncmov [#allocation3 + $0x3] }
 0x75f   :  { %s943_s20 = vpop.sfrf %942 }
 0x760   :  { %p1097_p1 = scmp.ne.s32.totalorder %s943_s20, 0 }
 0x762   :  { %947 = shalt.err (%p1097_p1)  }
 0x763   :  { %949 = vsyncmov [#allocation3 + $0x4] }
 0x766   :  { %s950_s14 = vpop.sfrf %949 }
 0x767   :  { %p1098_p2 = scmp.ne.s32.totalorder %s950_s14, 0 }
 0x769   :  { %954 = shalt.err (%p1098_p2)  }
 0x76a   :  { %956 = vsyncmov [#allocation3 + $0x5] }
 0x76d   :  { %s957_s15 = vpop.sfrf %956 }
 0x76e   :  { %p1099_p3 = scmp.ne.s32.totalorder %s957_s15, 0 }
 0x770   :  { %961 = shalt.err (%p1099_p3)  }
 0x771   :  { %963 = vsyncmov [#allocation3 + $0x6] }
 0x774   :  { %s964_s16 = vpop.sfrf %963 }
 0x775   :  { %p1100_p4 = scmp.ne.s32.totalorder %s964_s16, 0 }
 0x777   :  { %968 = shalt.err (%p1100_p4)  }
 0x778   :  { %970 = vsyncmov [#allocation3 + $0x7] }
 0x77b   :  { %s971_s4 = vpop.sfrf %970 }
 0x77c   :  { %p1101_p5 = scmp.ne.s32.totalorder %s971_s4, 0 }
 0x77e   :  { %975 = shalt.err (%p1101_p5)  }

</bundles_post_ra>
